<compile_context>
chip_gen: v7x
topology: tpu7x:2x2x1
jax: 0.10.0
libtpu: 0.0.40
codegen_flags: <defaults>
</compile_context>

<pallas_src>
import functools

import jax
import jax.numpy as jnp
from jax.experimental import pallas as pl
from jax.experimental.pallas import tpu as pltpu


# ----------------------------- Pallas kernel ------------------------------- #

def _fused_ir_kernel(x_ref, w1_ref, b1_ref, wdw_ref, b2_ref, w3_ref, b3_ref,
                     o_ref, *, H, W, use_res):
    """Fused InvertedResidual for one image, channels-on-sublanes layout.

    x_ref  : (1, Cin, HW)   input block (HW = H*W on the lane axis)
    w1_ref : (hid, Cin)     1x1 expand weight (BN scale folded in)
    b1_ref : (hid, 1)       folded BN bias
    wdw_ref: (hid, 9)       depthwise 3x3 taps, tap index = kh*3 + kw, BN folded
    b2_ref : (hid, 1)
    w3_ref : (Cout, hid)    1x1 project weight (BN folded)
    b3_ref : (Cout, 1)
    o_ref  : (1, Cout, HW)  output block
    """
    HW = H * W
    cout = w3_ref.shape[0]

    # ---- Stage 1: 1x1 expansion conv (channel matmul) + folded BN + ReLU ----
    h = jnp.dot(w1_ref[...], x_ref[0], preferred_element_type=jnp.float32)
    h = jnp.maximum(h + b1_ref[...], 0.0)                      # (hid, HW)

    # ---- Stage 2: depthwise 3x3 (stride 1, pad 1) via lane rolls + masks ----
    # Flattened pixel index p = h_idx*W + w_idx lives on the lane axis, so a
    # tap offset (dh, dw) is a lane roll by dh*W + dw; roll wrap-around and
    # out-of-image taps are zeroed with iota-derived validity masks.
    lane = jax.lax.broadcasted_iota(jnp.int32, (1, HW), 1)
    w_idx = lane % W
    row_ok_up = lane >= W                      # dh = -1: needs h_idx >= 1
    row_ok_dn = lane < (H - 1) * W             # dh = +1: needs h_idx <= H-2
    col_ok_lt = w_idx >= 1                     # dw = -1: needs w_idx >= 1
    col_ok_rt = w_idx <= W - 2                 # dw = +1: needs w_idx <= W-2

    acc = None
    for kh in range(3):
        dh = kh - 1
        for kw in range(3):
            dw = kw - 1
            off = dh * W + dw
            src = h if off == 0 else pltpu.roll(h, shift=(-off) % HW, axis=1)
            k = kh * 3 + kw
            tap = src * wdw_ref[:, k:k + 1]    # (hid,1) broadcast over lanes
            valid = None
            if dh == -1:
                valid = row_ok_up
            elif dh == 1:
                valid = row_ok_dn
            if dw == -1:
                valid = col_ok_lt if valid is None else valid & col_ok_lt
            elif dw == 1:
                valid = col_ok_rt if valid is None else valid & col_ok_rt
            if valid is not None:
                tap = jnp.where(valid, tap, 0.0)
            acc = tap if acc is None else acc + tap
    hdw = jnp.maximum(acc + b2_ref[...], 0.0)                  # (hid, HW)

    # ---- Stage 3: 1x1 projection conv + folded BN (+ residual) ----
    y = jnp.dot(w3_ref[...], hdw, preferred_element_type=jnp.float32)
    y = y + b3_ref[...]
    if use_res:
        y = y + x_ref[0]        # re-read (cheap vld from resident VMEM block)
    o_ref[...] = y.reshape(1, cout, HW)


# ------------------------------ Wrapper ------------------------------------ #

def _fold_bn(gamma, beta, mean, var, eps=1e-5):
    scale = gamma / jnp.sqrt(var + eps)
    bias = beta - mean * scale
    return scale, bias


def _padded_tile_bytes(shape, itemsize=4):
    """Bytes of an f32 block after (8,128) sublane/lane padding."""
    lead = 1
    for d in shape[:-2]:
        lead *= d
    r = shape[-2] if len(shape) >= 2 else 1
    c = shape[-1]
    return lead * (pl.cdiv(r, 8) * 8) * (pl.cdiv(c, 128) * 128) * itemsize


def inverted_residual(x_nchw, params, in_ch, out_ch, expansion_ratio=6, stride=1):
    """Forward pass of InvertedResidual. Input/output are NCHW like PyTorch."""
    assert stride == 1, "TODO(synk): stride>1 depthwise not implemented (module default config uses stride=1)"
    use_res = (stride == 1) and (in_ch == out_ch)
    hid = in_ch * expansion_ratio

    N, C, H, W = x_nchw.shape
    HW = H * W
    # NCHW kept as-is; only a free contiguous reshape puts H*W on the lane axis.
    x = x_nchw.astype(jnp.float32).reshape(N, C, HW)

    s1, b1 = _fold_bn(*params["bn1"])
    s2, b2 = _fold_bn(*params["bn2"])
    s3, b3 = _fold_bn(*params["bn3"])

    # Fold BN scales into the conv weights (per output channel).
    w1f = params["w1"] * s1[:, None]          # (hid, Cin)
    wdwf = params["w_dw"] * s2[:, None]       # (hid, 9)
    w3f = params["w3"] * s3[:, None]          # (Cout, hid)
    b1 = b1[:, None]                          # (hid, 1)
    b2 = b2[:, None]                          # (hid, 1)
    b3 = b3[:, None]                          # (Cout, 1)

    block_shapes = [
        (1, in_ch, HW), (hid, in_ch), (hid, 1), (hid, 9), (hid, 1),
        (out_ch, hid), (out_ch, 1), (1, out_ch, HW),
    ]
    io_bytes = sum(_padded_tile_bytes(s) for s in block_shapes)
    live_bytes = 6 * _padded_tile_bytes((hid, HW))    # h/acc/shifted/hdw slack
    vmem_need = 2 * io_bytes + live_bytes             # 2x: double-buffered blocks
    vmem_limit = int(min(max(4 * vmem_need, 4 * 2**20), 32 * 2**20))

    flops = 2 * N * HW * (in_ch * hid + 9 * hid + hid * out_ch)
    bytes_accessed = 4 * (x.size + N * out_ch * HW + w1f.size + wdwf.size
                          + w3f.size + b1.size + b2.size + b3.size)
    cost = pl.CostEstimate(flops=int(flops), transcendentals=0,
                           bytes_accessed=int(bytes_accessed))

    kernel = functools.partial(_fused_ir_kernel, H=H, W=W, use_res=use_res)
    y = pl.pallas_call(
        kernel,
        out_shape=jax.ShapeDtypeStruct((N, out_ch, HW), jnp.float32),
        grid=(N,),
        in_specs=[
            pl.BlockSpec((1, in_ch, HW), lambda n: (n, 0, 0)),
            pl.BlockSpec((hid, in_ch), lambda n: (0, 0)),
            pl.BlockSpec((hid, 1), lambda n: (0, 0)),
            pl.BlockSpec((hid, 9), lambda n: (0, 0)),
            pl.BlockSpec((hid, 1), lambda n: (0, 0)),
            pl.BlockSpec((out_ch, hid), lambda n: (0, 0)),
            pl.BlockSpec((out_ch, 1), lambda n: (0, 0)),
        ],
        out_specs=pl.BlockSpec((1, out_ch, HW), lambda n: (n, 0, 0)),
        compiler_params=pltpu.CompilerParams(
            dimension_semantics=("parallel",),
            vmem_limit_bytes=vmem_limit),
        cost_estimate=cost,
    )(x, w1f, b1, wdwf, b2, w3f, b3)

    return y.reshape(N, out_ch, H, W)


# ------------------------------ Params -------------------------------------- #

def make_params(key, in_ch, out_ch, expansion_ratio=6):
    """Deterministic parameter init matching the PyTorch module's shapes."""
    hid = in_ch * expansion_ratio
    ks = jax.random.split(key, 6)

    def bn(k, c):
        k1, k2, k3, k4 = jax.random.split(k, 4)
        gamma = 1.0 + 0.1 * jax.random.normal(k1, (c,), jnp.float32)
        beta = 0.1 * jax.random.normal(k2, (c,), jnp.float32)
        mean = 0.05 * jax.random.normal(k3, (c,), jnp.float32)
        var = 0.5 + jax.random.uniform(k4, (c,), jnp.float32)
        return gamma, beta, mean, var

    p = {}
    # ConvBlock: Conv2d(in, hid, 1, bias=False) weight (hid, in, 1, 1) -> (hid, in)
    p["w1"] = 0.1 * jax.random.normal(ks[0], (hid, in_ch), jnp.float32)
    p["bn1"] = bn(ks[1], hid)
    # Depthwise Conv2d(hid, hid, 3, groups=hid) weight (hid, 1, 3, 3) -> (hid, 9)
    p["w_dw"] = 0.1 * jax.random.normal(ks[2], (hid, 1, 3, 3),
                                        jnp.float32).reshape(hid, 9)
    p["bn2"] = bn(ks[3], hid)
    # Conv2d(hid, out, 1, bias=False) weight (out, hid, 1, 1) -> (out, hid)
    p["w3"] = 0.1 * jax.random.normal(ks[4], (out_ch, hid), jnp.float32)
    p["bn3"] = bn(ks[5], out_ch)
    return p


# --------------------------- pure-JAX reference ----------------------------- #

def _reference(x_nchw, params, in_ch, out_ch, expansion_ratio=6, stride=1):
    hid = in_ch * expansion_ratio
    use_res = (stride == 1) and (in_ch == out_ch)
    x = x_nchw.astype(jnp.float32)
    s1, b1 = _fold_bn(*params["bn1"])
    s2, b2 = _fold_bn(*params["bn2"])
    s3, b3 = _fold_bn(*params["bn3"])

    # 1x1 expand + BN + ReLU
    h = jnp.einsum("nchw,dc->ndhw", x, params["w1"])
    h = jnp.maximum(h * s1[None, :, None, None] + b1[None, :, None, None], 0.0)

    # depthwise 3x3 + BN + ReLU
    w_dw = params["w_dw"].reshape(hid, 3, 3)
    w_hwio = jnp.transpose(w_dw, (1, 2, 0))[:, :, None, :]   # (3,3,1,hid)
    h = jax.lax.conv_general_dilated(
        h, w_hwio, window_strides=(stride, stride), padding=((1, 1), (1, 1)),
        dimension_numbers=("NCHW", "HWIO", "NCHW"), feature_group_count=hid)
    h = jnp.maximum(h * s2[None, :, None, None] + b2[None, :, None, None], 0.0)

    # 1x1 project + BN (+ residual)
    y = jnp.einsum("nchw,dc->ndhw", h, params["w3"])
    y = y * s3[None, :, None, None] + b3[None, :, None, None]
    if use_res:
        y = y + x
    return y


if __name__ == "__main__":
    key = jax.random.PRNGKey(0)
    k_x, k_p = jax.random.split(key)

    N, C, Hs, Ws = 2, 4, 16, 16
    in_ch = out_ch = C
    x = jax.random.normal(k_x, (N, C, Hs, Ws), jnp.float32)  # NCHW like PyTorch
    params = make_params(k_p, in_ch, out_ch, expansion_ratio=6)

    fwd = jax.jit(functools.partial(
        inverted_residual, in_ch=in_ch, out_ch=out_ch, expansion_ratio=6, stride=1))
    out = jax.block_until_ready(fwd(x, params))

    ref = _reference(x, params, in_ch, out_ch, expansion_ratio=6, stride=1)
    assert out.shape == (N, out_ch, Hs, Ws)
    assert jnp.allclose(out, ref, atol=1e-4, rtol=1e-4), "mismatch vs JAX reference"

    print("KERNEL_OK")
</pallas_src>

<mosaic_0001>
module attributes {stable_mosaic.version = 11 : i64} {
  func.func @_fused_ir_kernel(%arg0: i32, %arg1: memref<1x4x256xf32, #tpu.memory_space<vmem>>, %arg2: memref<24x4xf32, #tpu.memory_space<vmem>>, %arg3: memref<24x1xf32, #tpu.memory_space<vmem>>, %arg4: memref<24x9xf32, #tpu.memory_space<vmem>>, %arg5: memref<24x1xf32, #tpu.memory_space<vmem>>, %arg6: memref<4x24xf32, #tpu.memory_space<vmem>>, %arg7: memref<4x1xf32, #tpu.memory_space<vmem>>, %arg8: memref<1x4x256xf32, #tpu.memory_space<vmem>>) attributes {dimension_semantics = [#tpu.dimension_semantics<parallel>], iteration_bounds = array<i64: 2>, scalar_prefetch = 0 : i64, scratch_operands = 0 : i64, tpu.core_type = #tpu.core_type<tc>, window_params = [{transform_indices = @transform_0, window_bounds = array<i64: 1, 4, 256>}, {pipeline_mode = #tpu.pipeline_mode<synchronous>, transform_indices = @transform_1, window_bounds = array<i64: 24, 4>}, {pipeline_mode = #tpu.pipeline_mode<synchronous>, transform_indices = @transform_2, window_bounds = array<i64: 24, 1>}, {pipeline_mode = #tpu.pipeline_mode<synchronous>, transform_indices = @transform_3, window_bounds = array<i64: 24, 9>}, {pipeline_mode = #tpu.pipeline_mode<synchronous>, transform_indices = @transform_4, window_bounds = array<i64: 24, 1>}, {pipeline_mode = #tpu.pipeline_mode<synchronous>, transform_indices = @transform_5, window_bounds = array<i64: 4, 24>}, {pipeline_mode = #tpu.pipeline_mode<synchronous>, transform_indices = @transform_6, window_bounds = array<i64: 4, 1>}, {transform_indices = @transform_7, window_bounds = array<i64: 1, 4, 256>}]} {
    %c0 = arith.constant 0 : index
    %c0_0 = arith.constant 0 : index
    %0 = vector.load %arg2[%c0, %c0_0] : memref<24x4xf32, #tpu.memory_space<vmem>>, vector<24x4xf32>
    %c0_1 = arith.constant 0 : index
    %c0_2 = arith.constant 0 : index
    %c0_3 = arith.constant 0 : index
    %1 = vector.load %arg1[%c0_1, %c0_2, %c0_3] : memref<1x4x256xf32, #tpu.memory_space<vmem>>, vector<1x4x256xf32>
    %2 = vector.shape_cast %1 : vector<1x4x256xf32> to vector<4x256xf32>
    %cst = arith.constant dense<0.000000e+00> : vector<24x256xf32>
    %3 = tpu.matmul %0, %2, %cst {dimension_numbers = #tpu.dot_dimension_numbers<[1], [0], [0], [1], [0, 0, 1, 1], [], []>} : vector<24x4xf32>, vector<4x256xf32>, vector<24x256xf32> -> vector<24x256xf32>
    %c0_4 = arith.constant 0 : index
    %c0_5 = arith.constant 0 : index
    %4 = vector.load %arg3[%c0_4, %c0_5] : memref<24x1xf32, #tpu.memory_space<vmem>>, vector<24x1xf32>
    %5 = vector.broadcast %4 : vector<24x1xf32> to vector<24x256xf32>
    %6 = arith.addf %3, %5 : vector<24x256xf32>
    %cst_6 = arith.constant 0.000000e+00 : f32
    %7 = vector.broadcast %cst_6 : f32 to vector<24x256xf32>
    %8 = arith.maximumf %6, %7 : vector<24x256xf32>
    %9 = tpu.iota {dimensions = array<i32: 1>} : vector<1x256xi32>
    %c16_i32 = arith.constant 16 : i32
    %c0_i32 = arith.constant 0 : i32
    %10 = arith.cmpi eq, %c16_i32, %c0_i32 : i32
    %c1_i32 = arith.constant 1 : i32
    %11 = arith.select %10, %c1_i32, %c16_i32 : i32
    %12 = vector.broadcast %11 : i32 to vector<1x256xi32>
    %13 = arith.remsi %9, %12 : vector<1x256xi32>
    %c0_i32_7 = arith.constant 0 : i32
    %14 = vector.broadcast %c0_i32_7 : i32 to vector<1x256xi32>
    %15 = arith.cmpi ne, %13, %14 : vector<1x256xi32>
    %c0_i32_8 = arith.constant 0 : i32
    %16 = vector.broadcast %c0_i32_8 : i32 to vector<1x256xi32>
    %17 = arith.cmpi slt, %13, %16 : vector<1x256xi32>
    %c0_i32_9 = arith.constant 0 : i32
    %18 = arith.cmpi slt, %11, %c0_i32_9 : i32
    %19 = vector.broadcast %18 : i1 to vector<1x256xi1>
    %20 = vector.broadcast %19 : vector<1x256xi1> to vector<1x256xi1>
    %21 = arith.xori %17, %20 : vector<1x256xi1>
    %22 = arith.andi %21, %15 : vector<1x256xi1>
    %23 = vector.broadcast %11 : i32 to vector<1x256xi32>
    %24 = arith.addi %13, %23 : vector<1x256xi32>
    %25 = arith.select %22, %24, %13 : vector<1x256xi1>, vector<1x256xi32>
    %c16_i32_10 = arith.constant 16 : i32
    %26 = vector.broadcast %c16_i32_10 : i32 to vector<1x256xi32>
    %27 = arith.cmpi sge, %9, %26 : vector<1x256xi32>
    %c240_i32 = arith.constant 240 : i32
    %28 = vector.broadcast %c240_i32 : i32 to vector<1x256xi32>
    %29 = arith.cmpi slt, %9, %28 : vector<1x256xi32>
    %c1_i32_11 = arith.constant 1 : i32
    %30 = vector.broadcast %c1_i32_11 : i32 to vector<1x256xi32>
    %31 = arith.cmpi sge, %25, %30 : vector<1x256xi32>
    %c14_i32 = arith.constant 14 : i32
    %32 = vector.broadcast %c14_i32 : i32 to vector<1x256xi32>
    %33 = arith.cmpi sle, %25, %32 : vector<1x256xi32>
    %c17_i32 = arith.constant 17 : i32
    %34 = tpu.dynamic_rotate %8 by %c17_i32 dim 1 : vector<24x256xf32>, i32 -> vector<24x256xf32>
    %c0_12 = arith.constant 0 : index
    %c0_13 = arith.constant 0 : index
    %35 = vector.load %arg4[%c0_12, %c0_13] : memref<24x9xf32, #tpu.memory_space<vmem>>, vector<24x1xf32>
    %36 = vector.broadcast %35 : vector<24x1xf32> to vector<24x256xf32>
    %37 = arith.mulf %34, %36 : vector<24x256xf32>
    %38 = arith.andi %27, %31 : vector<1x256xi1>
    %cst_14 = arith.constant 0.000000e+00 : f32
    %39 = vector.shape_cast %38 : vector<1x256xi1> to vector<1x256xi1>
    %40 = vector.broadcast %39 : vector<1x256xi1> to vector<24x256xi1>
    %41 = vector.broadcast %cst_14 : f32 to vector<24x256xf32>
    %42 = arith.select %40, %37, %41 : vector<24x256xi1>, vector<24x256xf32>
    %c16_i32_15 = arith.constant 16 : i32
    %43 = tpu.dynamic_rotate %8 by %c16_i32_15 dim 1 : vector<24x256xf32>, i32 -> vector<24x256xf32>
    %c0_16 = arith.constant 0 : index
    %c1 = arith.constant 1 : index
    %44 = vector.load %arg4[%c0_16, %c1] : memref<24x9xf32, #tpu.memory_space<vmem>>, vector<24x1xf32>
    %45 = vector.broadcast %44 : vector<24x1xf32> to vector<24x256xf32>
    %46 = arith.mulf %43, %45 : vector<24x256xf32>
    %cst_17 = arith.constant 0.000000e+00 : f32
    %47 = vector.shape_cast %27 : vector<1x256xi1> to vector<1x256xi1>
    %48 = vector.broadcast %47 : vector<1x256xi1> to vector<24x256xi1>
    %49 = vector.broadcast %cst_17 : f32 to vector<24x256xf32>
    %50 = arith.select %48, %46, %49 : vector<24x256xi1>, vector<24x256xf32>
    %51 = arith.addf %42, %50 : vector<24x256xf32>
    %c15_i32 = arith.constant 15 : i32
    %52 = tpu.dynamic_rotate %8 by %c15_i32 dim 1 : vector<24x256xf32>, i32 -> vector<24x256xf32>
    %c0_18 = arith.constant 0 : index
    %c2 = arith.constant 2 : index
    %53 = vector.load %arg4[%c0_18, %c2] : memref<24x9xf32, #tpu.memory_space<vmem>>, vector<24x1xf32>
    %54 = vector.broadcast %53 : vector<24x1xf32> to vector<24x256xf32>
    %55 = arith.mulf %52, %54 : vector<24x256xf32>
    %56 = arith.andi %27, %33 : vector<1x256xi1>
    %cst_19 = arith.constant 0.000000e+00 : f32
    %57 = vector.shape_cast %56 : vector<1x256xi1> to vector<1x256xi1>
    %58 = vector.broadcast %57 : vector<1x256xi1> to vector<24x256xi1>
    %59 = vector.broadcast %cst_19 : f32 to vector<24x256xf32>
    %60 = arith.select %58, %55, %59 : vector<24x256xi1>, vector<24x256xf32>
    %61 = arith.addf %51, %60 : vector<24x256xf32>
    %c1_i32_20 = arith.constant 1 : i32
    %62 = tpu.dynamic_rotate %8 by %c1_i32_20 dim 1 : vector<24x256xf32>, i32 -> vector<24x256xf32>
    %c0_21 = arith.constant 0 : index
    %c3 = arith.constant 3 : index
    %63 = vector.load %arg4[%c0_21, %c3] : memref<24x9xf32, #tpu.memory_space<vmem>>, vector<24x1xf32>
    %64 = vector.broadcast %63 : vector<24x1xf32> to vector<24x256xf32>
    %65 = arith.mulf %62, %64 : vector<24x256xf32>
    %cst_22 = arith.constant 0.000000e+00 : f32
    %66 = vector.shape_cast %31 : vector<1x256xi1> to vector<1x256xi1>
    %67 = vector.broadcast %66 : vector<1x256xi1> to vector<24x256xi1>
    %68 = vector.broadcast %cst_22 : f32 to vector<24x256xf32>
    %69 = arith.select %67, %65, %68 : vector<24x256xi1>, vector<24x256xf32>
    %70 = arith.addf %61, %69 : vector<24x256xf32>
    %c0_23 = arith.constant 0 : index
    %c4 = arith.constant 4 : index
    %71 = vector.load %arg4[%c0_23, %c4] : memref<24x9xf32, #tpu.memory_space<vmem>>, vector<24x1xf32>
    %72 = vector.broadcast %71 : vector<24x1xf32> to vector<24x256xf32>
    %73 = arith.mulf %8, %72 : vector<24x256xf32>
    %74 = arith.addf %70, %73 : vector<24x256xf32>
    %c255_i32 = arith.constant 255 : i32
    %75 = tpu.dynamic_rotate %8 by %c255_i32 dim 1 : vector<24x256xf32>, i32 -> vector<24x256xf32>
    %c0_24 = arith.constant 0 : index
    %c5 = arith.constant 5 : index
    %76 = vector.load %arg4[%c0_24, %c5] : memref<24x9xf32, #tpu.memory_space<vmem>>, vector<24x1xf32>
    %77 = vector.broadcast %76 : vector<24x1xf32> to vector<24x256xf32>
    %78 = arith.mulf %75, %77 : vector<24x256xf32>
    %cst_25 = arith.constant 0.000000e+00 : f32
    %79 = vector.shape_cast %33 : vector<1x256xi1> to vector<1x256xi1>
    %80 = vector.broadcast %79 : vector<1x256xi1> to vector<24x256xi1>
    %81 = vector.broadcast %cst_25 : f32 to vector<24x256xf32>
    %82 = arith.select %80, %78, %81 : vector<24x256xi1>, vector<24x256xf32>
    %83 = arith.addf %74, %82 : vector<24x256xf32>
    %c241_i32 = arith.constant 241 : i32
    %84 = tpu.dynamic_rotate %8 by %c241_i32 dim 1 : vector<24x256xf32>, i32 -> vector<24x256xf32>
    %c0_26 = arith.constant 0 : index
    %c6 = arith.constant 6 : index
    %85 = vector.load %arg4[%c0_26, %c6] : memref<24x9xf32, #tpu.memory_space<vmem>>, vector<24x1xf32>
    %86 = vector.broadcast %85 : vector<24x1xf32> to vector<24x256xf32>
    %87 = arith.mulf %84, %86 : vector<24x256xf32>
    %88 = arith.andi %29, %31 : vector<1x256xi1>
    %cst_27 = arith.constant 0.000000e+00 : f32
    %89 = vector.shape_cast %88 : vector<1x256xi1> to vector<1x256xi1>
    %90 = vector.broadcast %89 : vector<1x256xi1> to vector<24x256xi1>
    %91 = vector.broadcast %cst_27 : f32 to vector<24x256xf32>
    %92 = arith.select %90, %87, %91 : vector<24x256xi1>, vector<24x256xf32>
    %93 = arith.addf %83, %92 : vector<24x256xf32>
    %c240_i32_28 = arith.constant 240 : i32
    %94 = tpu.dynamic_rotate %8 by %c240_i32_28 dim 1 : vector<24x256xf32>, i32 -> vector<24x256xf32>
    %c0_29 = arith.constant 0 : index
    %c7 = arith.constant 7 : index
    %95 = vector.load %arg4[%c0_29, %c7] : memref<24x9xf32, #tpu.memory_space<vmem>>, vector<24x1xf32>
    %96 = vector.broadcast %95 : vector<24x1xf32> to vector<24x256xf32>
    %97 = arith.mulf %94, %96 : vector<24x256xf32>
    %cst_30 = arith.constant 0.000000e+00 : f32
    %98 = vector.shape_cast %29 : vector<1x256xi1> to vector<1x256xi1>
    %99 = vector.broadcast %98 : vector<1x256xi1> to vector<24x256xi1>
    %100 = vector.broadcast %cst_30 : f32 to vector<24x256xf32>
    %101 = arith.select %99, %97, %100 : vector<24x256xi1>, vector<24x256xf32>
    %102 = arith.addf %93, %101 : vector<24x256xf32>
    %c239_i32 = arith.constant 239 : i32
    %103 = tpu.dynamic_rotate %8 by %c239_i32 dim 1 : vector<24x256xf32>, i32 -> vector<24x256xf32>
    %c0_31 = arith.constant 0 : index
    %c8 = arith.constant 8 : index
    %104 = vector.load %arg4[%c0_31, %c8] : memref<24x9xf32, #tpu.memory_space<vmem>>, vector<24x1xf32>
    %105 = vector.broadcast %104 : vector<24x1xf32> to vector<24x256xf32>
    %106 = arith.mulf %103, %105 : vector<24x256xf32>
    %107 = arith.andi %29, %33 : vector<1x256xi1>
    %cst_32 = arith.constant 0.000000e+00 : f32
    %108 = vector.shape_cast %107 : vector<1x256xi1> to vector<1x256xi1>
    %109 = vector.broadcast %108 : vector<1x256xi1> to vector<24x256xi1>
    %110 = vector.broadcast %cst_32 : f32 to vector<24x256xf32>
    %111 = arith.select %109, %106, %110 : vector<24x256xi1>, vector<24x256xf32>
    %112 = arith.addf %102, %111 : vector<24x256xf32>
    %c0_33 = arith.constant 0 : index
    %c0_34 = arith.constant 0 : index
    %113 = vector.load %arg5[%c0_33, %c0_34] : memref<24x1xf32, #tpu.memory_space<vmem>>, vector<24x1xf32>
    %114 = vector.broadcast %113 : vector<24x1xf32> to vector<24x256xf32>
    %115 = arith.addf %112, %114 : vector<24x256xf32>
    %cst_35 = arith.constant 0.000000e+00 : f32
    %116 = vector.broadcast %cst_35 : f32 to vector<24x256xf32>
    %117 = arith.maximumf %115, %116 : vector<24x256xf32>
    %c0_36 = arith.constant 0 : index
    %c0_37 = arith.constant 0 : index
    %118 = vector.load %arg6[%c0_36, %c0_37] : memref<4x24xf32, #tpu.memory_space<vmem>>, vector<4x24xf32>
    %cst_38 = arith.constant dense<0.000000e+00> : vector<4x256xf32>
    %119 = tpu.matmul %118, %117, %cst_38 {dimension_numbers = #tpu.dot_dimension_numbers<[1], [0], [0], [1], [0, 0, 1, 1], [], []>} : vector<4x24xf32>, vector<24x256xf32>, vector<4x256xf32> -> vector<4x256xf32>
    %c0_39 = arith.constant 0 : index
    %c0_40 = arith.constant 0 : index
    %120 = vector.load %arg7[%c0_39, %c0_40] : memref<4x1xf32, #tpu.memory_space<vmem>>, vector<4x1xf32>
    %121 = vector.broadcast %120 : vector<4x1xf32> to vector<4x256xf32>
    %122 = arith.addf %119, %121 : vector<4x256xf32>
    %c0_41 = arith.constant 0 : index
    %c0_42 = arith.constant 0 : index
    %c0_43 = arith.constant 0 : index
    %123 = vector.load %arg1[%c0_41, %c0_42, %c0_43] : memref<1x4x256xf32, #tpu.memory_space<vmem>>, vector<1x4x256xf32>
    %124 = vector.shape_cast %123 : vector<1x4x256xf32> to vector<4x256xf32>
    %125 = arith.addf %122, %124 : vector<4x256xf32>
    %126 = vector.shape_cast %125 : vector<4x256xf32> to vector<1x4x256xf32>
    %c0_44 = arith.constant 0 : index
    %c0_45 = arith.constant 0 : index
    %c0_46 = arith.constant 0 : index
    %127 = vector.load %arg8[%c0_44, %c0_45, %c0_46] : memref<1x4x256xf32, #tpu.memory_space<vmem>>, vector<1x4x256xf32>
    tpu.vector_store %arg8[%c0_44, %c0_45, %c0_46], %126 {strides = array<i32>} : memref<1x4x256xf32, #tpu.memory_space<vmem>>, vector<1x4x256xf32>,
    return
  }
  func.func @transform_0(%arg0: i32) -> (i32, i32, i32) {
    %c0_i32 = arith.constant 0 : i32
    %c0_i32_0 = arith.constant 0 : i32
    %c0_i32_1 = arith.constant 0 : i32
    return %arg0, %c0_i32, %c0_i32_0 : i32, i32, i32
  }
  func.func @transform_1(%arg0: i32) -> (i32, i32) {
    %c0_i32 = arith.constant 0 : i32
    %c0_i32_0 = arith.constant 0 : i32
    %c0_i32_1 = arith.constant 0 : i32
    return %c0_i32, %c0_i32_0 : i32, i32
  }
  func.func @transform_2(%arg0: i32) -> (i32, i32) {
    %c0_i32 = arith.constant 0 : i32
    %c0_i32_0 = arith.constant 0 : i32
    %c0_i32_1 = arith.constant 0 : i32
    return %c0_i32, %c0_i32_0 : i32, i32
  }
  func.func @transform_3(%arg0: i32) -> (i32, i32) {
    %c0_i32 = arith.constant 0 : i32
    %c0_i32_0 = arith.constant 0 : i32
    %c0_i32_1 = arith.constant 0 : i32
    return %c0_i32, %c0_i32_0 : i32, i32
  }
  func.func @transform_4(%arg0: i32) -> (i32, i32) {
    %c0_i32 = arith.constant 0 : i32
    %c0_i32_0 = arith.constant 0 : i32
    %c0_i32_1 = arith.constant 0 : i32
    return %c0_i32, %c0_i32_0 : i32, i32
  }
  func.func @transform_5(%arg0: i32) -> (i32, i32) {
    %c0_i32 = arith.constant 0 : i32
    %c0_i32_0 = arith.constant 0 : i32
    %c0_i32_1 = arith.constant 0 : i32
    return %c0_i32, %c0_i32_0 : i32, i32
  }
  func.func @transform_6(%arg0: i32) -> (i32, i32) {
    %c0_i32 = arith.constant 0 : i32
    %c0_i32_0 = arith.constant 0 : i32
    %c0_i32_1 = arith.constant 0 : i32
    return %c0_i32, %c0_i32_0 : i32, i32
  }
  func.func @transform_7(%arg0: i32) -> (i32, i32, i32) {
    %c0_i32 = arith.constant 0 : i32
    %c0_i32_0 = arith.constant 0 : i32
    %c0_i32_1 = arith.constant 0 : i32
    return %arg0, %c0_i32, %c0_i32_0 : i32, i32, i32
  }
}

</mosaic_0001>

<bundles_post_ra>
// kernel: inverted_residual.1
= control target key start
LH: loop header
LB: loop body
LE: loop exit
PB: predicated region body
PF: predicated region fallthrough
CT: control target
= control target key end

     0   :  { %s1210_s24 = smov 0   ;;  %s1809_s0 = inlined_call_operand.vmem [shape: f32[2,4,256], index: 0, kind: input, shape index: {}]   ;;  %s1810_s1 = inlined_call_operand.vmem [shape: f32[24,4], index: 1, kind: input, shape index: {}]   ;;  %s1811_s2 = inlined_call_operand.vmem [shape: f32[24,1], index: 2, kind: input, shape index: {}]   ;;  %s1812_s3 = inlined_call_operand.vmem [shape: f32[24,9], index: 3, kind: input, shape index: {}]   ;;  %s1813_s4 = inlined_call_operand.vmem [shape: f32[24,1], index: 4, kind: input, shape index: {}]   ;;  %s1814_s5 = inlined_call_operand.vmem [shape: f32[4,24], index: 5, kind: input, shape index: {}]   ;;  %s1815_s6 = inlined_call_operand.vmem [shape: f32[4,1], index: 6, kind: input, shape index: {}]   ;;  %s1816_s7 = inlined_call_operand.vmem [shape: f32[2,4,256], index: 7, kind: output, shape index: {}]  }
   0x1 LB: > { %s1073_s25 = sadd.s32 4294967295, %s1150_s24   ;;  %p1077_p0 = scmp.ge.s32.totalorder %s1150_s24, 1  ;;  %s1150_s24 = sphi %s1210_s24, %s17_s24  }
   0x2   : > { %p237_p1 = scmp.lt.s32.totalorder %s1150_s24, 3 }
   0x4   : > { %p238_p2 = pnand %p1077_p0, %p237_p1 }
   0x6   : > { %241 = sbr.rel (%p238_p2) target bundleno = 690 (0x2b2), region = 48 }
   0xd   : > { %p269_p3 = scmp.lt.s32.totalorder %s1073_s25, 1  ;;  %v1152_v0 = vmov 0.0   ;;  %v285_v1 = vld [vmem:[%s1811_s2 + $0x10] sm:$0xff]  ;;  %v1153_v2 = vmov 0   ;;  %v283_v3 = vld [vmem:[%s1811_s2] sm:$0xff]  ;;  %v284_v5 = vld [vmem:[%s1811_s2 + $0x8] sm:$0xff] }
   0xe   : > { %382 = vmatprep.mubr.f32.mxu0 %v1152_v0  ;;  %1003 = vmatprep.mubr.f32.mxu1 %v1152_v0  ;;  %v1232_v4 = vld [vmem:[%s1812_s3] sm:$0xff]  ;;  %vm313_vm0 = vcmask 1043456   ;;  %vm303_vm1 = vcmask 31744   ;;  %v1154_v9 = vmov 1   ;;  %v280_v10 = vld [vmem:[%s1810_s1 + $0x8] sm:$0xff]  ;;  %v281_v12 = vld [vmem:[%s1810_s1 + $0x10] sm:$0xff] }
   0xf   : > { %s1856_s25 = smov (!%p269_p3, %s1073_s25), 1  ;;  %1123 = vset.pattern.permute.xlu1 %v1153_v2  ;;  %1122 = vset.pattern.permute.xlu0 %v1153_v2  ;;  %v279_v8 = vld [vmem:[%s1810_s1] sm:$0xff]  ;;  %v462_v11 = vld [vmem:[%s1812_s3 + $0x8] sm:$0xff]  ;;  %v1155_v13 = vmov 2   ;;  %v1271_v14 = vld [vmem:[%s1812_s3 + $0x10] sm:$0xff]  ;;  %v1156_v15 = vmov 3  }
  0x10   : > { %298 = vperm.xlu1 %1123, %v285_v1   ;;  %288 = vperm.xlu0 %1122, %v283_v3   ;;  %s1090_s30 = sshll.u32 %s1856_s25, 3  ;;  %v1157_v16 = vmov 4   ;;  %v1158_v17 = vmov 5   ;;  %v1159_v18 = vmov 6   ;;  %v1160_v19 = vmov 7   ;;  %v898_v21 = vld [vmem:[%s1813_s4] sm:$0xff] }
  0x11   : > { %s273_s14 = scalar_lea.vmem %s1809_s0, %s1090_s30  ;;  %v1161_v20 = vmov 8   ;;  %v899_v22 = vld [vmem:[%s1813_s4 + $0x8] sm:$0xff]  ;;  %s1162_s9 = smov 16  }
  0x12   : > { %v1242_v6 = vld [vmem:[%s273_s14] sm:$0xff]  ;;  %s1163_s10 = smov 17   ;;  %s1164_s11 = smov 15  }
  0x13   : > { %1824 = vst [vmem:[#allocation2_spill] sm:$0xff] %v1242_v6  ;;  %v1246_v7 = vcombine.high %v1242_v6, %v1242_v6  ;;  %s1165_s12 = smov 112   ;;  %s1166_s13 = smov 1  }
  0x14   : > { %466 = vperm.xlu1 %1123, %v1232_v4   ;;  %293 = vperm.xlu0 %1122, %v284_v5   ;;  %s1167_s14 = smov 127   ;;  %s1168_s15 = smov 113  }
  0x15   : > { %1825 = vst [vmem:[#allocation3_spill] sm:$0xff] %v1246_v7  ;;  %1082 = vmatprep.subr.msk.mxu0 %vm313_vm0, %v1246_v7  ;;  %s1169_s16 = smov 111   ;;  %s278_s27 = scalar_lea.vmem %s1816_s7, %s1090_s30 }
  0x16   : > { %1083 = vmatpush1.msk.msra.mxu0 %vm313_vm0, %v1242_v6 }
  0x17   : > { %1084 = vmatmul.mubr.msk.f32.vlgmr.msra.gmra.mrb[0].mxu0 %vm303_vm1, %v279_v8  ;;  %v929_v8 = vld [vmem:[%s1815_s6] sm:$0xf] }
  0x18   : > { %1124 = vset.pattern.permute.xlu1 %v1154_v9  ;;  %388 = vmatprep.mubr.f32.mxu0 %v1152_v0 }
  0x19   : > { %517 = vperm.xlu1 %1124, %v1232_v4   ;;  %471 = vperm.xlu0 %1122, %v462_v11  }
  0x1b   : > { %1085 = vmatmul.mubr.msk.f32.gmra.mrb[2].mxu0 %vm303_vm1, %v280_v10 }
  0x1c   : > { %394 = vmatprep.mubr.f32.mxu0 %v1152_v0 }
  0x1d   : > { %1126 = vset.pattern.permute.xlu1 %v1155_v13  ;;  %1125 = vset.pattern.permute.xlu0 %v1154_v9 }
  0x1e   : > { %570 = vperm.xlu1 %1126, %v1232_v4   ;;  %521 = vperm.xlu0 %1125, %v462_v11  }
  0x1f   : > { %1086 = vmatmul.mubr.msk.f32.gmra.mrb[4].mxu0 %vm303_vm1, %v281_v12 }
  0x22   : > { %574 = vperm.xlu1 %1126, %v462_v11   ;;  %525 = vperm.xlu0 %1125, %v1271_v14  }
  0x26   : > { %1127 = vset.pattern.permute.xlu1 %v1156_v15  ;;  %1130 = vset.pattern.permute.xlu0 %v1155_v13 }
  0x27   : > { %629 = vperm.xlu1 %1127, %v462_v11   ;;  %578 = vperm.xlu0 %1130, %v1271_v14  }
  0x2b   : > { %1128 = vset.pattern.permute.xlu1 %v1153_v2  ;;  %1131 = vset.pattern.permute.xlu0 %v1156_v15 }
  0x2c   : > { %476 = vperm.xlu1 %1128, %v1271_v14   ;;  %625 = vperm.xlu0 %1131, %v1232_v4  }
  0x30   : > { %1129 = vset.pattern.permute.xlu1 %v1157_v16  ;;  %633 = vperm.xlu0 %1131, %v1271_v14  }
  0x31   : > { %659 = vperm.xlu1 %1129, %v1232_v4  }
  0x34   : > { %1136 = vset.pattern.permute.xlu0 %v1158_v17 }
  0x35   : > { %663 = vperm.xlu1 %1129, %v462_v11   ;;  %710 = vperm.xlu0 %1136, %v1271_v14  }
  0x39   : > { %1132 = vset.pattern.permute.xlu1 %v1158_v17  ;;  %1138 = vset.pattern.permute.xlu0 %v1159_v18 }
  0x3a   : > { %702 = vperm.xlu1 %1132, %v1232_v4   ;;  %763 = vperm.xlu0 %1138, %v1271_v14  }
  0x3e   : > { %706 = vperm.xlu1 %1132, %v462_v11   ;;  %1139 = vset.pattern.permute.xlu0 %v1160_v19 }
  0x3f   : > { %810 = vperm.xlu0 %1139, %v1232_v4  }
  0x42   : > { %1133 = vset.pattern.permute.xlu1 %v1159_v18 }
  0x43   : > { %755 = vperm.xlu1 %1133, %v1232_v4   ;;  %818 = vperm.xlu0 %1139, %v1271_v14  }
  0x47   : > { %759 = vperm.xlu1 %1133, %v462_v11   ;;  %1141 = vset.pattern.permute.xlu0 %v1161_v20 }
  0x4b   : > { %1134 = vset.pattern.permute.xlu1 %v1160_v19 }
  0x4c   : > { %814 = vperm.xlu1 %1134, %v462_v11  }
  0x50   : > { %1135 = vset.pattern.permute.xlu1 %v1157_v16 }
  0x51   : > { %667 = vperm.xlu1 %1135, %v1271_v14  }
  0x55   : > { %1137 = vset.pattern.permute.xlu1 %v1161_v20 }
  0x56   : > { %863 = vperm.xlu1 %1137, %v1232_v4   ;;  %v900_v4 = vld [vmem:[%s1813_s4 + $0x10] sm:$0xff] }
  0x5a   : > { %867 = vperm.xlu1 %1137, %v462_v11  }
  0x5e   : > { %1140 = vset.pattern.permute.xlu1 %v1153_v2 }
  0x5f   : > { %903 = vperm.xlu1 %1140, %v898_v21  }
  0x63   : > { %908 = vperm.xlu1 %1140, %v899_v22   ;;  %v407_v22 = vlaneseq }
  0x8f   : > { %v1295_v23 = vpop.permute.xlu1 %298  ;;  %v289_v30 = vpop.permute.xlu0 %288 }
  0x93   : > { %v1297_v24 = vpop.permute.xlu1 %466  ;;  %v294_v37 = vpop.permute.xlu0 %293 }
  0x98   : > { %v1299_v25 = vpop.permute.xlu1 %517  ;;  %v1346_v53 = vpop.permute.xlu0 %471 }
  0x9d   : > { %v1301_v26 = vpop.permute.xlu1 %570  ;;  %v1357_v56 = vpop.permute.xlu0 %521 }
  0xa1   : > { %v1303_v27 = vpop.permute.xlu1 %574  ;;  %v1365_v59 = vpop.permute.xlu0 %525 }
  0xa6   : > { %v1305_v28 = vpop.permute.xlu1 %629  ;;  %v1379_v62 = vpop.permute.xlu0 %578 }
  0xab   : > { %v1307_v29 = vpop.permute.xlu1 %476  ;;  %v1387_v0 = vpop.permute.xlu0 %625 }
  0xaf   : > { %v1398_v3 = vpop.permute.xlu0 %633 }
  0xb0   : > { %v660_v32 = vpop.permute.xlu1 %659 }
  0xb4   : > { %v664_v45 = vpop.permute.xlu1 %663  ;;  %v1411_v9 = vpop.permute.xlu0 %710 }
  0xb9   : > { %v1350_v54 = vpop.permute.xlu1 %702  ;;  %v1419_v10 = vpop.permute.xlu0 %763 }
  0xba   : > { %1826 = vst [vmem:[#allocation4_spill] sm:$0xff] %v1419_v10 }
  0xbd   : > { %v1359_v57 = vpop.permute.xlu1 %706 }
  0xbe   : > { %v1425_v12 = vpop.permute.xlu0 %810 }
  0xc2   : > { %v1371_v60 = vpop.permute.xlu1 %755 }
  0xc6   : > { %v1381_v63 = vpop.permute.xlu1 %759 }
  0xcb   : > { %v1392_v1 = vpop.permute.xlu1 %814 }
  0xd0   : > { %v1404_v5 = vpop.permute.xlu1 %667 }
  0xea   : > { %v384_v31 = vpop.f32.mrb[0].mxu0 }
  0xeb   : > { %v385_v33 = vadd.f32 %v384_v31, %v289_v30  ;;  %v386_v34 = vpop.f32.mrb[1].mxu0  ;;  %v1439_v31 = vand.u32 127, %v407_v22 }
  0xec   : > { %v387_v35 = vadd.f32 %v386_v34, %v289_v30 }
  0xed   : > { %v401_v36 = vmax.f32 %v385_v33, 0.0  ;;  %v1446_v34 = vadd.s32 128, %v1439_v31  ;;  %vm454_vm2 = vcmp.lt.s32.totalorder %v1439_v31, 17  ;;  %vm509_vm3 = vcmp.lt.s32.totalorder %v1439_v31, 16 }
  0xee   : > { %v402_v38 = vmax.f32 %v387_v35, 0.0  ;;  %v390_v39 = vpop.f32.mrb[2].mxu0  ;;  %vm434_vm4 = vcmp.ge.s32.totalorder %v1439_v31, 16  ;;  %vm562_vm7 = vcmp.lt.s32.totalorder %v1439_v31, 15  ;;  %vm1822_vm12 = vcmp.lt.s32.totalorder %v1439_v31, 1 }
  0xef   : > { %v1309_v40 = vmul.f32 %v660_v32, %v401_v36  ;;  %v391_v41 = vadd.f32 %v390_v39, %v294_v37  ;;  %v392_v42 = vpop.f32.mrb[3].mxu0  ;;  %497 = vrot.lane.b32.xlu0 %v401_v36, %s1162_s9  ;;  %442 = vrot.lane.b32.xlu1 %v401_v36, %s1163_s10  ;;  %vm1823_vm13 = vcmp.lt.s32.totalorder %v1439_v31, 127  ;;  %vm747_vm14 = vcmp.lt.s32.totalorder %v1439_v31, 113 }
  0xf0   : > { %v1313_v43 = vmul.f32 %v660_v32, %v402_v38  ;;  %v393_v44 = vadd.f32 %v392_v42, %v294_v37  ;;  %v414_v37 = vand.u32 15, %v1439_v31  ;;  %vm437_vm15 = vcmp.lt.s32.totalorder %v1446_v34, 240 }
  0xf1   : > { %v403_v46 = vmax.f32 %v391_v41, 0.0  ;;  %vm1821_vm1 = vcmp.lt.s32.totalorder %v1439_v31, 112 }
  0xf2   : > { %v404_v47 = vmax.f32 %v393_v44, 0.0  ;;  %v396_v48 = vpop.f32.mrb[4].mxu0  ;;  %vm1459_vm5 = vcmp.ge.s32.totalorder %v414_v37, 1  ;;  %vm1470_vm6 = vcmp.le.s32.totalorder %v414_v37, 14 }
  0xf3   : > { %v1315_v49 = vmul.f32 %v664_v45, %v403_v46  ;;  %550 = vrot.lane.b32.xlu0 %v401_v36, %s1164_s11  ;;  %790 = vrot.lane.b32.xlu1 %v401_v36, %s1165_s12  ;;  %v398_v50 = vpop.f32.mrb[5].mxu0  ;;  %v397_v52 = vadd.f32 %v396_v48, %v1295_v23  ;;  %vm1485_vm9 = vmand %vm434_vm4, %vm1459_vm5 }
  0xf4   : > { %v1319_v51 = vmul.f32 %v664_v45, %v404_v47  ;;  %v399_v58 = vadd.f32 %v398_v50, %v1295_v23  ;;  %vm1501_vm11 = vmand %vm434_vm4, %vm1470_vm6 }
  0xf5   : > { %v1352_v55 = vmax.f32 %v397_v52, 0.0 }
  0xf6   : > { %v1373_v61 = vmax.f32 %v399_v58, 0.0 }
  0xf7   : > { %605 = vrot.lane.b32.xlu0 %v401_v36, %s1166_s13  ;;  %448 = vrot.lane.b32.xlu1 %v402_v38, %s1163_s10 }
  0xfb   : > { %682 = vrot.lane.b32.xlu0 %v401_v36, %s1167_s14  ;;  %499 = vrot.lane.b32.xlu1 %v403_v46, %s1162_s9 }
  0xff   : > { %735 = vrot.lane.b32.xlu0 %v401_v36, %s1168_s15  ;;  %552 = vrot.lane.b32.xlu1 %v403_v46, %s1164_s11 }
 0x103   : > { %843 = vrot.lane.b32.xlu0 %v401_v36, %s1169_s16  ;;  %607 = vrot.lane.b32.xlu1 %v403_v46, %s1166_s13 }
 0x107   : > { %503 = vrot.lane.b32.xlu0 %v402_v38, %s1162_s9  ;;  %684 = vrot.lane.b32.xlu1 %v403_v46, %s1167_s14 }
 0x10b   : > { %556 = vrot.lane.b32.xlu0 %v402_v38, %s1164_s11  ;;  %737 = vrot.lane.b32.xlu1 %v403_v46, %s1168_s15 }
 0x10f   : > { %611 = vrot.lane.b32.xlu0 %v402_v38, %s1166_s13  ;;  %792 = vrot.lane.b32.xlu1 %v403_v46, %s1165_s12 }
 0x113   : > { %688 = vrot.lane.b32.xlu0 %v402_v38, %s1167_s14  ;;  %845 = vrot.lane.b32.xlu1 %v403_v46, %s1169_s16 }
 0x117   : > { %741 = vrot.lane.b32.xlu0 %v402_v38, %s1168_s15  ;;  %505 = vrot.lane.b32.xlu1 %v404_v47, %s1162_s9 }
 0x11b   : > { %796 = vrot.lane.b32.xlu0 %v402_v38, %s1165_s12  ;;  %558 = vrot.lane.b32.xlu1 %v404_v47, %s1164_s11 }
 0x11f   : > { %849 = vrot.lane.b32.xlu0 %v402_v38, %s1169_s16  ;;  %613 = vrot.lane.b32.xlu1 %v404_v47, %s1166_s13  ;;  %v421_v38 = vand.u32 15, %v1446_v34 }
 0x121   : > { %vm1477_vm8 = vcmp.ge.s32.totalorder %v421_v38, 1  ;;  %vm1493_vm10 = vcmp.le.s32.totalorder %v421_v38, 14 }
 0x122   : > { %vm1560_vm0 = vmand %vm437_vm15, %vm1477_vm8 }
 0x123   : > { %444 = vrot.lane.b32.xlu0 %v403_v46, %s1163_s10  ;;  %690 = vrot.lane.b32.xlu1 %v404_v47, %s1167_s14 }
 0x127   : > { %450 = vrot.lane.b32.xlu0 %v404_v47, %s1163_s10  ;;  %743 = vrot.lane.b32.xlu1 %v404_v47, %s1168_s15 }
 0x12b   : > { %446 = vrot.lane.b32.xlu0 %v1352_v55, %s1163_s10  ;;  %798 = vrot.lane.b32.xlu1 %v404_v47, %s1165_s12 }
 0x12f   : > { %554 = vrot.lane.b32.xlu0 %v1352_v55, %s1164_s11  ;;  %851 = vrot.lane.b32.xlu1 %v404_v47, %s1169_s16 }
 0x133   : > { %609 = vrot.lane.b32.xlu0 %v1352_v55, %s1166_s13  ;;  %501 = vrot.lane.b32.xlu1 %v1352_v55, %s1162_s9 }
 0x137   : > { %686 = vrot.lane.b32.xlu0 %v1352_v55, %s1167_s14  ;;  %452 = vrot.lane.b32.xlu1 %v1373_v61, %s1163_s10 }
 0x13b   : > { %507 = vrot.lane.b32.xlu0 %v1373_v61, %s1162_s9  ;;  %739 = vrot.lane.b32.xlu1 %v1352_v55, %s1168_s15 }
 0x13f   : > { %871 = vperm.xlu0 %1141, %v1271_v14   ;;  %847 = vrot.lane.b32.xlu1 %v1352_v55, %s1169_s16  ;;  %v1431_v14 = vpop.permute.xlu0 %818 }
 0x140   : > { %1827 = vst [vmem:[#allocation5_spill] sm:$0xff] %v1431_v14 }
 0x143   : > { %794 = vrot.lane.b32.xlu0 %v1352_v55, %s1165_s12  ;;  %560 = vrot.lane.b32.xlu1 %v1373_v61, %s1164_s11 }
 0x144   : > { %1142 = vset.pattern.permute.xlu0 %v1153_v2  ;;  %v1415_v2 = vpop.permute.xlu1 %863 }
 0x147   : > { %615 = vrot.lane.b32.xlu1 %v1373_v61, %s1166_s13  ;;  %913 = vperm.xlu0 %1142, %v900_v4  }
 0x148   : > { %v1421_v11 = vpop.permute.xlu1 %867 }
 0x14b   : > { %692 = vrot.lane.b32.xlu1 %v1373_v61, %s1167_s14  ;;  %932 = vperm.xlu0 %1142, %v929_v8  }
 0x14c   : > { %v1427_v13 = vpop.permute.xlu1 %903 }
 0x14f   : > { %745 = vrot.lane.b32.xlu1 %v1373_v61, %s1168_s15 }
 0x150   : > { %v1433_v15 = vpop.permute.xlu1 %908 }
 0x153   : > { %800 = vrot.lane.b32.xlu1 %v1373_v61, %s1165_s12 }
 0x157   : > { %853 = vrot.lane.b32.xlu1 %v1373_v61, %s1169_s16 }
 0x161   : > { %v498_v16 = vpop.permute.xlu0 %497  ;;  %v443_v17 = vpop.permute.xlu1 %442 }
 0x165   : > { %v551_v18 = vpop.permute.xlu0 %550  ;;  %v1435_v19 = vpop.permute.xlu1 %790 }
 0x169   : > { %v606_v20 = vpop.permute.xlu0 %605  ;;  %v449_v21 = vpop.permute.xlu1 %448 }
 0x16a   : > { %v455_v44 = vsel %vm454_vm2, %v443_v17, %v449_v21  ;;  %v458_v45 = vsel %vm454_vm2, %v449_v21, %v443_v17 }
 0x16b   : > { %v479_v4 = vmul.f32 %v1297_v24, %v458_v45  ;;  %v480_v8 = vmul.f32 %v1297_v24, %v455_v44 }
 0x16d   : > { %v683_v23 = vpop.permute.xlu0 %682  ;;  %v1437_v30 = vpop.permute.xlu1 %499  ;;  %v492_v7 = vsel %vm1477_vm8, %v480_v8, 0.0 }
 0x171   : > { %v1441_v32 = vpop.permute.xlu0 %735  ;;  %v1443_v33 = vpop.permute.xlu1 %552 }
 0x175   : > { %v1448_v35 = vpop.permute.xlu0 %843  ;;  %v1450_v36 = vpop.permute.xlu1 %607 }
 0x179   : > { %v504_v39 = vpop.permute.xlu0 %503  ;;  %v1457_v41 = vpop.permute.xlu1 %684 }
 0x17a   : > { %v513_v46 = vsel %vm509_vm3, %v504_v39, %v498_v16  ;;  %v510_v50 = vsel %vm509_vm3, %v498_v16, %v504_v39 }
 0x17b   : > { %v528_v47 = vmul.f32 %v1299_v25, %v513_v46  ;;  %v529_v38 = vmul.f32 %v1299_v25, %v510_v50  ;;  %v491_v46 = vsel %vm1485_vm9, %v479_v4, 0.0 }
 0x17d   : > { %v557_v17 = vpop.permute.xlu0 %556  ;;  %v1491_v21 = vpop.permute.xlu1 %737  ;;  %v538_v39 = vsel %vm434_vm4, %v528_v47, 0.0  ;;  %v545_v4 = vadd.f32 %v529_v38, %v492_v7 }
 0x17e   : > { %v563_v37 = vsel %vm562_vm7, %v551_v18, %v557_v17  ;;  %v566_v24 = vsel %vm562_vm7, %v557_v17, %v551_v18  ;;  %v544_v25 = vadd.f32 %v538_v39, %v491_v46 }
 0x17f   : > { %v581_v44 = vmul.f32 %v1301_v26, %v566_v24  ;;  %v582_v45 = vmul.f32 %v1301_v26, %v563_v37 }
 0x181   : > { %v593_v18 = vsel %vm1501_vm11, %v581_v44, 0.0  ;;  %v612_v17 = vpop.permute.xlu0 %611  ;;  %v1521_v6 = vpop.permute.xlu1 %792  ;;  %v594_v47 = vsel %vm1493_vm10, %v582_v45, 0.0 }
 0x182   : > { %v618_v50 = vsel %vm1822_vm12, %v606_v20, %v612_v17  ;;  %v621_v26 = vsel %vm1822_vm12, %v612_v17, %v606_v20  ;;  %v599_v24 = vadd.f32 %v593_v18, %v544_v25  ;;  %v600_v44 = vadd.f32 %v594_v47, %v545_v4 }
 0x183   : > { %v636_v37 = vmul.f32 %v1387_v0, %v621_v26  ;;  %v637_v8 = vmul.f32 %v1387_v0, %v618_v50 }
 0x185   : > { %v646_v39 = vsel %vm1459_vm5, %v636_v37, 0.0  ;;  %v647_v45 = vsel %vm1477_vm8, %v637_v8, 0.0  ;;  %v689_v46 = vpop.permute.xlu0 %688  ;;  %v1536_v14 = vpop.permute.xlu1 %845 }
 0x186   : > { %v652_v10 = vadd.f32 %v646_v39, %v599_v24  ;;  %v695_v7 = vsel %vm1823_vm13, %v683_v23, %v689_v46  ;;  %v698_v0 = vsel %vm1823_vm13, %v689_v46, %v683_v23  ;;  %v653_v20 = vadd.f32 %v647_v45, %v600_v44 }
 0x187   : > { %v713_v38 = vmul.f32 %v1350_v54, %v695_v7  ;;  %v714_v17 = vmul.f32 %v1350_v54, %v698_v0 }
 0x188   : > { %v676_v18 = vadd.f32 %v1309_v40, %v652_v10  ;;  %v677_v4 = vadd.f32 %v1313_v43, %v653_v20 }
 0x189   : > { %v723_v25 = vsel %vm1470_vm6, %v713_v38, 0.0  ;;  %v742_v47 = vpop.permute.xlu0 %741  ;;  %v506_v50 = vpop.permute.xlu1 %505  ;;  %v724_v37 = vsel %vm1493_vm10, %v714_v17, 0.0 }
 0x18a   : > { %v748_v23 = vsel %vm747_vm14, %v1441_v32, %v742_v47  ;;  %v751_v26 = vsel %vm747_vm14, %v742_v47, %v1441_v32  ;;  %v729_v32 = vadd.f32 %v723_v25, %v676_v18 }
 0x18b   : > { %v766_v54 = vmul.f32 %v1371_v60, %v748_v23  ;;  %v767_v10 = vmul.f32 %v1371_v60, %v751_v26  ;;  %v730_v60 = vadd.f32 %v724_v37, %v677_v4  ;;  %v514_v23 = vsel %vm509_vm3, %v506_v50, %v1437_v30 }
 0x18c   : > { %v530_v4 = vmul.f32 %v1357_v56, %v514_v23 }
 0x18d   : > { %v778_v43 = vsel %vm1459_vm5, %v766_v54, 0.0  ;;  %v797_v8 = vpop.permute.xlu0 %796  ;;  %v559_v24 = vpop.permute.xlu1 %558  ;;  %v779_v44 = vsel %vm1560_vm0, %v767_v10, 0.0  ;;  %v511_v10 = vsel %vm509_vm3, %v1437_v30, %v506_v50 }
 0x18e   : > { %v784_v39 = vadd.f32 %v778_v43, %v729_v32  ;;  %v803_v45 = vsel %vm1821_vm1, %v1435_v19, %v797_v8  ;;  %v806_v46 = vsel %vm1821_vm1, %v797_v8, %v1435_v19  ;;  %v785_v20 = vadd.f32 %v779_v44, %v730_v60 }
 0x18f   : > { %v821_v7 = vmul.f32 %v1425_v12, %v803_v45  ;;  %v822_v0 = vmul.f32 %v1425_v12, %v806_v46  ;;  %v564_v12 = vsel %vm562_vm7, %v1443_v33, %v559_v24  ;;  %v567_v54 = vsel %vm562_vm7, %v559_v24, %v1443_v33 }
 0x190   : > { %vm855_vm1 = vcmp.lt.s32.totalorder %v1439_v31, 111  ;;  %v583_v30 = vmul.f32 %v1303_v27, %v567_v54  ;;  %v584_v50 = vmul.f32 %v1303_v27, %v564_v12  ;;  %v531_v45 = vmul.f32 %v1357_v56, %v511_v10 }
 0x191   : > { %v1581_v38 = vadd.f32 %v821_v7, %v784_v39  ;;  %v850_v18 = vpop.permute.xlu0 %849  ;;  %v614_v17 = vpop.permute.xlu1 %613  ;;  %v832_v25 = vsel %vm437_vm15, %v822_v0, 0.0  ;;  %v540_v60 = vsel %vm434_vm4, %v530_v4, 0.0 }
 0x192   : > { %v1585_v47 = vadd.f32 %v832_v25, %v785_v20  ;;  %v619_v43 = vsel %vm1822_vm12, %v1450_v36, %v614_v17  ;;  %v622_v8 = vsel %vm1822_vm12, %v614_v17, %v1450_v36  ;;  %v856_v36 = vsel %vm855_vm1, %v1448_v35, %v850_v18  ;;  %vm1648_vm12 = vmand %vm437_vm15, %vm1493_vm10 }
 0x193   : > { %v859_v46 = vsel %vm855_vm1, %v850_v18, %v1448_v35  ;;  %v638_v7 = vmul.f32 %v1305_v28, %v622_v8  ;;  %v639_v27 = vmul.f32 %v1305_v28, %v619_v43  ;;  %v595_v28 = vsel %vm1501_vm11, %v583_v30, 0.0 }
 0x194   : > { %v596_v23 = vsel %vm1493_vm10, %v584_v50, 0.0  ;;  %v875_v4 = vmul.f32 %v1415_v2, %v859_v46 }
 0x195   : > { %v445_v26 = vpop.permute.xlu0 %444  ;;  %v691_v19 = vpop.permute.xlu1 %690 }
 0x196   : > { %v696_v17 = vsel %vm1823_vm13, %v1457_v41, %v691_v19  ;;  %v699_v35 = vsel %vm1823_vm13, %v691_v19, %v1457_v41  ;;  %vm1844_vm13 = vcmp.lt.s32.totalorder %v1439_v31, 112 }
 0x197   : > { %v715_v43 = vmul.f32 %v1359_v57, %v696_v17  ;;  %v716_v8 = vmul.f32 %v1359_v57, %v699_v35 }
 0x199   : > { %v451_v37 = vpop.permute.xlu0 %450  ;;  %v744_v32 = vpop.permute.xlu1 %743 }
 0x19a   : > { %v456_v44 = vsel %vm454_vm2, %v445_v26, %v451_v37  ;;  %v459_v33 = vsel %vm454_vm2, %v451_v37, %v445_v26  ;;  %v874_v26 = vmul.f32 %v1415_v2, %v856_v36  ;;  %v749_v54 = vsel %vm747_vm14, %v1491_v21, %v744_v32 }
 0x19b   : > { %v481_v24 = vmul.f32 %v1346_v53, %v459_v33  ;;  %v482_v39 = vmul.f32 %v1346_v53, %v456_v44  ;;  %v752_v10 = vsel %vm747_vm14, %v744_v32, %v1491_v21  ;;  %v648_v2 = vsel %vm1459_vm5, %v638_v7, 0.0 }
 0x19c   : > { %v649_v37 = vsel %vm1477_vm8, %v639_v27, 0.0  ;;  %v886_v21 = vsel %vm1470_vm6, %v874_v26, 0.0  ;;  %v887_v32 = vsel %vm1648_vm12, %v875_v4, 0.0  ;;  %v725_v7 = vsel %vm1470_vm6, %v715_v43, 0.0 }
 0x19d   : > { %v493_v53 = vsel %vm1485_vm9, %v481_v24, 0.0  ;;  %v494_v56 = vsel %vm1477_vm8, %v482_v39, 0.0  ;;  %v1630_v0 = vpop.permute.xlu0 %446  ;;  %v799_v20 = vpop.permute.xlu1 %798  ;;  %v768_v39 = vmul.f32 %v1381_v63, %v749_v54  ;;  %v726_v27 = vsel %vm1493_vm10, %v716_v8, 0.0 }
 0x19e   : > { %v546_v18 = vadd.f32 %v540_v60, %v493_v53  ;;  %v547_v25 = vadd.f32 %v531_v45, %v494_v56  ;;  %v807_v24 = vsel %vm1844_vm13, %v799_v20, %v1521_v6  ;;  %v769_v45 = vmul.f32 %v1381_v63, %v752_v10 }
 0x19f   : > { %v893_v35 = vadd.f32 %v887_v32, %v1585_v47 }
 0x1a0   : > { %v601_v41 = vadd.f32 %v595_v28, %v546_v18  ;;  %v602_v19 = vadd.f32 %v596_v23, %v547_v25  ;;  %v781_v18 = vsel %vm1560_vm0, %v769_v45, 0.0 }
 0x1a1   : > { %v1664_v44 = vpop.permute.xlu0 %554  ;;  %v852_v33 = vpop.permute.xlu1 %851 }
 0x1a2   : > { %v654_v30 = vadd.f32 %v648_v2, %v601_v41  ;;  %v655_v50 = vadd.f32 %v649_v37, %v602_v19  ;;  %v857_v36 = vsel %vm855_vm1, %v1536_v14, %v852_v33  ;;  %v860_v46 = vsel %vm855_vm1, %v852_v33, %v1536_v14 }
 0x1a3   : > { %v780_v14 = vsel %vm1459_vm5, %v768_v39, 0.0  ;;  %v876_v25 = vmul.f32 %v1421_v11, %v857_v36  ;;  %v877_v28 = vmul.f32 %v1421_v11, %v860_v46  ;;  %v917_v11 = vadd.f32 %v1427_v13, %v893_v35 }
 0x1a4   : > { %v678_v57 = vadd.f32 %v1315_v49, %v654_v30  ;;  %v679_v60 = vadd.f32 %v1319_v51, %v655_v50  ;;  %v804_v49 = vsel %vm1844_vm13, %v1521_v6, %v799_v20  ;;  %v824_v51 = vmul.f32 %v1392_v1, %v807_v24 }
 0x1a5   : > { %v610_v63 = vpop.permute.xlu0 %609  ;;  %v502_v53 = vpop.permute.xlu1 %501  ;;  %v892_v6 = vadd.f32 %v886_v21, %v1581_v38  ;;  %v823_v26 = vmul.f32 %v1392_v1, %v804_v49  ;;  %v888_v10 = vsel %vm1470_vm6, %v876_v25, 0.0  ;;  %v889_v2 = vsel %vm1648_vm12, %v877_v28, 0.0 }
 0x1a6   : > { %v731_v56 = vadd.f32 %v725_v7, %v678_v57  ;;  %v732_v17 = vadd.f32 %v726_v27, %v679_v60  ;;  %v834_v4 = vsel %vm437_vm15, %v824_v51, 0.0  ;;  %v923_v50 = vmax.f32 %v917_v11, 0.0 }
 0x1a7   : > { %v916_v43 = vadd.f32 %v1427_v13, %v892_v6 }
 0x1a8   : > { %v786_v20 = vadd.f32 %v780_v14, %v731_v56  ;;  %v787_v23 = vadd.f32 %v781_v18, %v732_v17 }
 0x1a9   : > { %v687_v47 = vpop.permute.xlu0 %686  ;;  %v453_v41 = vpop.permute.xlu1 %452  ;;  %v922_v32 = vmax.f32 %v916_v43, 0.0 }
 0x1aa   : > { %v839_v19 = vadd.f32 %v823_v26, %v786_v20  ;;  %v840_v54 = vadd.f32 %v834_v4, %v787_v23  ;;  %v460_v57 = vsel %vm454_vm2, %v453_v41, %v1630_v0 }
 0x1ab   : > { %v483_v46 = vmul.f32 %v1307_v29, %v460_v57 }
 0x1ac   : > { %v894_v38 = vadd.f32 %v888_v10, %v839_v19  ;;  %v895_v37 = vadd.f32 %v889_v2, %v840_v54  ;;  %v674_v2 = vmul.f32 %v1404_v5, %v1352_v55 }
 0x1ad   : > { %v508_v1 = vpop.permute.xlu0 %507  ;;  %v740_v8 = vpop.permute.xlu1 %739  ;;  %v495_v14 = vsel %vm1485_vm9, %v483_v46, 0.0 }
 0x1ae   : > { %v919_v33 = vadd.f32 %v1433_v15, %v895_v37  ;;  %v918_v30 = vadd.f32 %v1433_v15, %v894_v38  ;;  %v515_v24 = vsel %vm509_vm3, %v508_v1, %v502_v53  ;;  %v457_v15 = vsel %vm454_vm2, %v1630_v0, %v453_v41 }
 0x1af   : > { %v532_v36 = vmul.f32 %v1365_v59, %v515_v24  ;;  %v512_v7 = vsel %vm509_vm3, %v502_v53, %v508_v1  ;;  %v484_v56 = vmul.f32 %v1307_v29, %v457_v15  ;;  %vm1845_vm2 = vcmp.lt.s32.totalorder %v1439_v31, 1 }
 0x1b0   : > { %v925_v21 = vmax.f32 %v919_v33, 0.0  ;;  %v924_v39 = vmax.f32 %v918_v30, 0.0  ;;  %v533_v53 = vmul.f32 %v1365_v59, %v512_v7  ;;  %vm1846_vm3 = vmmov %vm1845_vm2  ;;  %v675_v37 = vmul.f32 %v1404_v5, %v1373_v61  ;;  %v1849_v30 = vld [vmem:[#allocation4_spill] sm:$0xff] }
 0x1b1   : > { %v1712_v45 = vpop.permute.xlu1 %847  ;;  %v542_v0 = vsel %vm434_vm4, %v532_v36, 0.0  ;;  %v496_v6 = vsel %vm1477_vm8, %v484_v56, 0.0  ;;  %vm1847_vm4 = vcmp.lt.s32.totalorder %v1439_v31, 127  ;;  %v928_v31 = vld [vmem:[%s1814_s5] sm:$0xf] }
 0x1b2   : > { %v1092_v13 = vpack.c.bf16 %v925_v21, %v923_v50  ;;  %v1094_v60 = vpack.c.bf16 %v924_v39, %v922_v32  ;;  %v548_v28 = vadd.f32 %v542_v0, %v495_v14  ;;  %v549_v22 = vadd.f32 %v533_v53, %v496_v6 }
 0x1b4   : > { %1093 = vmatprep.subr.bf16.mxu1 %v1092_v13  ;;  %v1852_v13 = vld [vmem:[#allocation5_spill] sm:$0xff] }
 0x1b5   : > { %v561_v27 = vpop.permute.xlu1 %560  ;;  %1095 = vmatpush1.bf16.msra.mxu1 %v1094_v60 }
 0x1b6   : > { %v565_v49 = vsel %vm562_vm7, %v1664_v44, %v561_v27  ;;  %v568_v51 = vsel %vm562_vm7, %v561_v27, %v1664_v44  ;;  %vm1848_vm7 = vmmov %vm1847_vm4 }
 0x1b7   : > { %v585_v17 = vmul.f32 %v1379_v62, %v568_v51  ;;  %v586_v35 = vmul.f32 %v1379_v62, %v565_v49 }
 0x1b9   : > { %v597_v18 = vsel %vm1501_vm11, %v585_v17, 0.0  ;;  %v616_v25 = vpop.permute.xlu1 %615  ;;  %v598_v59 = vsel %vm1493_vm10, %v586_v35, 0.0 }
 0x1ba   : > { %v620_v29 = vsel %vm1845_vm2, %v610_v63, %v616_v25  ;;  %v623_v44 = vsel %vm1846_vm3, %v616_v25, %v610_v63  ;;  %v603_v20 = vadd.f32 %v597_v18, %v548_v28  ;;  %v604_v63 = vadd.f32 %v598_v59, %v549_v22  ;;  %v1853_v59 = vld [vmem:[#allocation2_spill] sm:$0xff] }
 0x1bb   : > { %v640_v62 = vmul.f32 %v1398_v3, %v623_v44  ;;  %v641_v58 = vmul.f32 %v1398_v3, %v620_v29 }
 0x1bd   : > { %v650_v23 = vsel %vm1459_vm5, %v640_v62, 0.0  ;;  %v651_v26 = vsel %vm1477_vm8, %v641_v58, 0.0  ;;  %v693_v4 = vpop.permute.xlu1 %692  ;;  %vm1850_vm8 = vmmov %vm1844_vm13  ;;  %v1854_v58 = vld [vmem:[#allocation3_spill] sm:$0xff] }
 0x1be   : > { %v656_v41 = vadd.f32 %v650_v23, %v603_v20  ;;  %v697_v19 = vsel %vm1847_vm4, %v687_v47, %v693_v4  ;;  %v700_v54 = vsel %vm1848_vm7, %v693_v4, %v687_v47  ;;  %v872_v3 = vpop.permute.xlu0 %871  ;;  %v657_v11 = vadd.f32 %v651_v26, %v604_v63  ;;  %vm1851_vm9 = vmmov %vm1850_vm8 }
 0x1bf   : > { %v717_v10 = vmul.f32 %v1411_v9, %v697_v19  ;;  %v718_v38 = vmul.f32 %v1411_v9, %v700_v54 }
 0x1c0   : > { %v680_v43 = vadd.f32 %v674_v2, %v656_v41  ;;  %v681_v24 = vadd.f32 %v675_v37, %v657_v11 }
 0x1c1   : > { %v746_v52 = vpop.permute.xlu1 %745  ;;  %v727_v33 = vsel %vm1470_vm6, %v717_v10, 0.0  ;;  %v728_v9 = vsel %vm1493_vm10, %v718_v38, 0.0 }
 0x1c2   : > { %v750_v1 = vsel %vm747_vm14, %v740_v8, %v746_v52  ;;  %v753_v47 = vsel %vm747_vm14, %v746_v52, %v740_v8  ;;  %v795_v5 = vpop.permute.xlu0 %794  ;;  %v733_v32 = vadd.f32 %v727_v33, %v680_v43  ;;  %v734_v36 = vadd.f32 %v728_v9, %v681_v24 }
 0x1c3   : > { %v770_v50 = vmul.f32 %v1849_v30, %v750_v1  ;;  %v771_v55 = vmul.f32 %v1849_v30, %v753_v47 }
 0x1c5   : > { %v782_v61 = vsel %vm1459_vm5, %v770_v50, 0.0  ;;  %v801_v21 = vpop.permute.xlu1 %800  ;;  %v783_v57 = vsel %vm1560_vm0, %v771_v55, 0.0  ;;  %vm935_vm5 = vcmask 195584  }
 0x1c6   : > { %v805_v8 = vsel %vm1850_vm8, %v795_v5, %v801_v21  ;;  %v808_v39 = vsel %vm1851_vm9, %v801_v21, %v795_v5  ;;  %v788_v16 = vadd.f32 %v782_v61, %v733_v32  ;;  %v789_v7 = vadd.f32 %v783_v57, %v734_v36  ;;  %v914_v14 = vpop.permute.xlu0 %913 }
 0x1c7   : > { %v826_v60 = vmul.f32 %v1852_v13, %v808_v39  ;;  %v825_v15 = vmul.f32 %v1852_v13, %v805_v8 }
 0x1c9   : > { %v836_v42 = vsel %vm437_vm15, %v826_v60, 0.0  ;;  %v854_v46 = vpop.permute.xlu1 %853  ;;  %v841_v56 = vadd.f32 %v825_v15, %v788_v16 }
 0x1ca   : > { %v858_v27 = vsel %vm855_vm1, %v1712_v45, %v854_v46  ;;  %v861_v40 = vsel %vm855_vm1, %v854_v46, %v1712_v45  ;;  %v842_v0 = vadd.f32 %v836_v42, %v789_v7  ;;  %v933_v48 = vpop.permute.xlu0 %932 }
 0x1cb   : > { %v878_v49 = vmul.f32 %v872_v3, %v858_v27  ;;  %v879_v51 = vmul.f32 %v872_v3, %v861_v40 }
 0x1cd   : > { %v890_v17 = vsel %vm1470_vm6, %v878_v49, 0.0  ;;  %v891_v34 = vsel %vm1648_vm12, %v879_v51, 0.0 }
 0x1ce   : > { %v896_v35 = vadd.f32 %v890_v17, %v841_v56  ;;  %v897_v53 = vadd.f32 %v891_v34, %v842_v0 }
 0x1d0   : > { %v920_v18 = vadd.f32 %v914_v14, %v896_v35  ;;  %v921_v25 = vadd.f32 %v914_v14, %v897_v53 }
 0x1d2   : > { %v926_v28 = vmax.f32 %v920_v18, 0.0  ;;  %v927_v29 = vmax.f32 %v921_v25, 0.0 }
 0x1d4   : > { %943 = vmatprep.subr.mxu1 %v927_v29 }
 0x1d5   : > { %944 = vmatpush1.msra.mxu1 %v926_v28 }
 0x1d6   : > { %1087 = vmatmul.mubr.msk.f32.vlgmr.msra.gmra.mrb[0].mxu1 %vm935_vm5, %v928_v31 }
 0x2a9   : > { %v1005_v45 = vpop.f32.mrb[0].mxu1 }
 0x2aa   : > { %v1006_v12 = vadd.f32 %v1005_v45, %v933_v48  ;;  %v1007_v44 = vpop.f32.mrb[1].mxu1 }
 0x2ab   : > { %v1008_v6 = vadd.f32 %v1007_v44, %v933_v48 }
 0x2ac   : > { %v1011_v62 = vadd.f32 %v1006_v12, %v1853_v59 }
 0x2ad   : > { %v1012_v22 = vadd.f32 %v1008_v6, %v1854_v58 }
 0x2af   : > { %v1015_v20 = vcombine.low %v1011_v62, %v1012_v22 }
 0x2b1   : > { %1017 = vst [vmem:[%s278_s27] sm:$0xff] %v1015_v20 }
 0x2b2 PF: > { %s17_s24 = sadd.s32 1, %s1150_s24  }
 0x2b3   : > { %p14_p4 = scmp.ge.s32.totalorder %s17_s24, 4  }
 0x2b5   :  { %16 = sbr.rel (!%p14_p4) target bundleno = 1 (0x1), region = 78 }

</bundles_post_ra>
